<compile_context>
chip_gen: v5e
topology: v5e:2x2
jax: 0.10.0
libtpu: 0.0.40
codegen_flags: <defaults>
</compile_context>

<pallas_src>
import functools

import jax
import jax.numpy as jnp
from jax.experimental import pallas as pl
from jax.experimental.pallas import tpu as pltpu


_LANE = 128
_SUBLANE_BF16 = 16        # bf16 packs 16 rows per sublane group
_TM_MAX = 512             # batch-tile target (fills the 256x256 MXU M-dim twice)
_MAX_UNROLL = 4           # static unroll threshold for the layer loop


def _round_up(x, m):
    return ((x + m - 1) // m) * m


@functools.lru_cache(maxsize=1)
def _vmem_capacity_bytes():
    """Generation-aware VMEM capacity (v5e/v6e: 128 MiB, v7x: 64 MiB)."""
    try:
        info = pltpu.get_tpu_info()
        cap = int(getattr(info, "vmem_capacity_bytes", 0))
        if cap > 0:
            return cap
    except Exception:
        pass
    return 64 * 1024 * 1024   # conservative fallback (v7x per-TensorCore VMEM)


def _resident_spec(block_shape):
    """BlockSpec for a grid-invariant (resident) operand: constant index_map and
    single-buffered -- there is nothing to prefetch, so no double buffer."""
    index_map = lambda i, _n=len(block_shape): (0,) * _n
    try:
        return pl.BlockSpec(block_shape, index_map, pipeline_mode=pl.Buffered(1))
    except TypeError:
        # TODO(synk): jax without BlockSpec(pipeline_mode=...) falls back to the
        # default double-buffering for the resident weights.
        return pl.BlockSpec(block_shape, index_map)


# ----------------------------------------------------------------------------
# Fused MLP kernels: one grid step = one batch tile pushed through ALL layers.
#   layer 0 :  y = x @ W0 + b0
#   layer l>0: y = relu(y) @ Wl + bl          (Dropout == identity at inference)
# ----------------------------------------------------------------------------
def _mlp_kernel(x_ref, w0_ref, b0_ref, wr_ref, br_ref, o_ref, *, num_rest):
    cdt = w0_ref.dtype                                         # bf16 on the MXU
    h = x_ref[...].astype(cdt)                                 # (tm, Kp)
    y = jnp.dot(h, w0_ref[...], preferred_element_type=jnp.float32)
    y = y + b0_ref[...].astype(jnp.float32)                    # (tm, Dp) f32

    def layer(l, y):
        h = jnp.maximum(y, 0.0).astype(cdt)                    # fused ReLU (VPU)
        y = jnp.dot(h, wr_ref[l], preferred_element_type=jnp.float32)
        return y + br_ref[l].astype(jnp.float32)

    if num_rest <= _MAX_UNROLL:
        for l in range(num_rest):                              # small L: unroll
            y = layer(l, y)
    else:                                                      # large L: bounded live range
        y = jax.lax.fori_loop(0, num_rest, layer, y)

    o_ref[...] = y.astype(o_ref.dtype)


def _mlp_kernel_single(x_ref, w0_ref, b0_ref, o_ref):
    cdt = w0_ref.dtype
    h = x_ref[...].astype(cdt)
    y = jnp.dot(h, w0_ref[...], preferred_element_type=jnp.float32)
    o_ref[...] = (y + b0_ref[...].astype(jnp.float32)).astype(o_ref.dtype)


# ----------------------------------------------------------------------------
# Parameter packing (done ONCE, outside the per-call path).
# ----------------------------------------------------------------------------
def pack_params(params, compute_dtype=jnp.bfloat16):
    """params: list of (w, b) with w shape (in, out), b shape (out,).

    Layer 0 keeps its own contraction dim (round_up(K,128) x Dp); layers 1..L-1
    are stacked at (Dp, Dp).  Zero padding is mathematically exact here."""
    K, out_dim = params[0][0].shape
    Kp = _round_up(K, _LANE)
    Dp = _round_up(out_dim, _LANE)

    w0, b0 = params[0]
    w0_p = jnp.pad(w0.astype(compute_dtype), ((0, Kp - K), (0, Dp - out_dim)))
    b0_p = jnp.pad(b0.astype(jnp.float32), (0, Dp - out_dim)).reshape(1, Dp)

    if len(params) > 1:
        wr = jnp.stack([
            jnp.pad(w.astype(compute_dtype),
                    ((0, Dp - w.shape[0]), (0, Dp - w.shape[1])))
            for (w, _) in params[1:]])
        br = jnp.stack([
            jnp.pad(b.astype(jnp.float32), (0, Dp - b.shape[0])).reshape(1, Dp)
            for (_, b) in params[1:]])
    else:
        wr, br = None, None
    return w0_p, b0_p, wr, br


# ----------------------------------------------------------------------------
# Jitted forward on pre-packed params: pad/cast/slice fuse with the launch.
# ----------------------------------------------------------------------------
@functools.partial(jax.jit, static_argnames=("out_dim",))
def _apply_packed(x, w0, b0, wr, br, *, out_dim):
    M, K = x.shape
    Kp, Dp = w0.shape
    num_rest = 0 if wr is None else wr.shape[0]
    out_dtype = x.dtype

    cbytes = jnp.dtype(w0.dtype).itemsize
    obytes = jnp.dtype(out_dtype).itemsize
    xbytes = max(jnp.dtype(x.dtype).itemsize, cbytes)

    # ---- generation-aware VMEM budget, and tell the compiler about it ------
    vmem_cap = _vmem_capacity_bytes()
    budget = int(0.70 * vmem_cap)            # headroom for Mosaic internal scratch
    vmem_limit = int(0.90 * vmem_cap)

    resident = ((Kp * Dp + num_rest * Dp * Dp) * cbytes      # weights, 1-buffered
                + (1 + num_rest) * Dp * 4)                   # biases (f32)

    def vmem_est(tm):
        return (resident
                + 2 * tm * Kp * xbytes        # double-buffered x tiles
                + 2 * tm * Dp * obytes        # double-buffered out tiles
                + 3 * tm * Dp * 4)            # live f32 intermediates (h / y)

    # ---- batch tile: multiple of 16 (bf16 sublanes), shrink to fit VMEM ----
    tm = max(_SUBLANE_BF16, min(_TM_MAX, _round_up(M, _SUBLANE_BF16)))
    while tm > _SUBLANE_BF16 and vmem_est(tm) > budget:
        tm = max(_SUBLANE_BF16, _round_up(tm // 2, _SUBLANE_BF16))
    # TODO(synk): if the resident weights ALONE exceed the budget (very large Dp
    # or L, esp. v7x's 64 MiB VMEM), stream per-layer weight tiles from HBM
    # (memory_space=pl.ANY + double-buffered make_async_copy) instead.

    # Rebalance so the last tile is not mostly padding.
    n_tiles = -(-M // tm)
    tm = max(_SUBLANE_BF16, _round_up(-(-M // n_tiles), _SUBLANE_BF16))
    # Prefer >= 2 grid steps so the "parallel" axis shards across both v7x TCs.
    if -(-M // tm) < 2 and M >= 2 * _SUBLANE_BF16:
        tm = max(_SUBLANE_BF16, _round_up(-(-M // 2), _SUBLANE_BF16))

    M_pad = _round_up(M, tm)

    # Pad/cast only when needed (fuses with the launch under jit); otherwise the
    # kernel casts to bf16 internally and x is streamed untouched.
    if M_pad != M or Kp != K:
        x_in = jnp.pad(x.astype(w0.dtype), ((0, M_pad - M), (0, Kp - K)))
    else:
        x_in = x

    x_spec = pl.BlockSpec((tm, Kp), lambda i: (i, 0))
    o_spec = pl.BlockSpec((tm, Dp), lambda i: (i, 0))

    if num_rest > 0:
        kernel = functools.partial(_mlp_kernel, num_rest=num_rest)
        in_specs = [x_spec,
                    _resident_spec((Kp, Dp)),            # layer-0 weight
                    _resident_spec((1, Dp)),             # layer-0 bias
                    _resident_spec((num_rest, Dp, Dp)),  # stacked weights 1..L-1
                    _resident_spec((num_rest, 1, Dp))]   # stacked biases  1..L-1
        operands = (x_in, w0, b0, wr, br)
    else:
        kernel = _mlp_kernel_single
        in_specs = [x_spec, _resident_spec((Kp, Dp)), _resident_spec((1, Dp))]
        operands = (x_in, w0, b0)

    out_pad = pl.pallas_call(
        kernel,
        out_shape=jax.ShapeDtypeStruct((M_pad, Dp), out_dtype),
        grid_spec=pltpu.PrefetchScalarGridSpec(
            num_scalar_prefetch=0,
            grid=(M_pad // tm,),
            in_specs=in_specs,
            out_specs=o_spec,
        ),
        compiler_params=pltpu.CompilerParams(
            dimension_semantics=("parallel",),   # megacore-shardable on v7x
            vmem_limit_bytes=vmem_limit,
        ),
    )(*operands)

    if M_pad != M or Dp != out_dim:
        return out_pad[:M, :out_dim]
    return out_pad


def linear_projection_forward(x, params, *, drop_probs=None,
                              compute_dtype=jnp.bfloat16):
    """Eval-mode forward (Dropout == identity, matching PyTorch .eval())."""
    # TODO(synk): training-mode dropout (p=drop_probs[0]) not implemented.
    del drop_probs
    w0, b0, wr, br = pack_params(params, compute_dtype)
    return _apply_packed(x, w0, b0, wr, br, out_dim=params[0][0].shape[1])


# ----------------------------------------------------------------------------
# Deterministic parameter init (PyTorch nn.Linear-style uniform bounds).
# ----------------------------------------------------------------------------
def init_params(key, input_dim, output_dim, num_layers, dtype=jnp.float32):
    params = []
    in_dim = input_dim
    for _ in range(num_layers):
        key, kw, kb = jax.random.split(key, 3)
        bound = 1.0 / jnp.sqrt(in_dim)
        w = jax.random.uniform(kw, (in_dim, output_dim), dtype,
                               minval=-bound, maxval=bound)
        b = jax.random.uniform(kb, (output_dim,), dtype,
                               minval=-bound, maxval=bound)
        params.append((w, b))
        in_dim = output_dim
    return params


# Pure-JAX reference using the same bf16-matmul / f32-accumulate arithmetic.
def reference_forward(x, params, compute_dtype=jnp.bfloat16):
    h = x.astype(compute_dtype)
    y = None
    for l, (w, b) in enumerate(params):
        if l > 0:
            h = jnp.maximum(y, 0.0).astype(compute_dtype)
        y = jnp.dot(h, w.astype(compute_dtype),
                    preferred_element_type=jnp.float32)
        y = y + b.astype(jnp.float32)
    return y.astype(x.dtype)


if __name__ == "__main__":
    input_dim, output_dim, num_layers = 32, 64, 3
    drop_probs = [0.1]          # unused at inference (Dropout == identity)
    batch = 16

    key = jax.random.PRNGKey(0)
    key, kx = jax.random.split(key)
    x = jax.random.normal(kx, (batch, input_dim), jnp.float32)
    params = init_params(key, input_dim, output_dim, num_layers)

    # Pack the weights once (hoisted out of the per-call path), then run the
    # jitted fused-MLP forward.
    packed = pack_params(params)
    out = _apply_packed(x, *packed, out_dim=output_dim)
    out = jax.block_until_ready(out)

    ref = reference_forward(x, params)
    assert out.shape == (batch, output_dim)
    assert jnp.allclose(out, ref, atol=1e-2, rtol=1e-2), "mismatch vs reference"

    print("KERNEL_OK")
</pallas_src>

<mosaic_0001>
module attributes {stable_mosaic.version = 11 : i64} {
  func.func @_mlp_kernel(%arg0: i32, %arg1: memref<16x128xbf16, #tpu.memory_space<vmem>>, %arg2: memref<128x128xbf16, #tpu.memory_space<vmem>>, %arg3: memref<1x128xf32, #tpu.memory_space<vmem>>, %arg4: memref<2x128x128xbf16, #tpu.memory_space<vmem>>, %arg5: memref<2x1x128xf32, #tpu.memory_space<vmem>>, %arg6: memref<16x128xf32, #tpu.memory_space<vmem>>) attributes {dimension_semantics = [#tpu.dimension_semantics<parallel>], iteration_bounds = array<i64: 1>, scalar_prefetch = 0 : i64, scratch_operands = 0 : i64, tpu.core_type = #tpu.core_type<tc>, window_params = [{transform_indices = @transform_0, window_bounds = array<i64: 16, 128>}, {pipeline_mode = #tpu.pipeline_mode<synchronous>, transform_indices = @transform_1, window_bounds = array<i64: 128, 128>}, {pipeline_mode = #tpu.pipeline_mode<synchronous>, transform_indices = @transform_2, window_bounds = array<i64: 1, 128>}, {pipeline_mode = #tpu.pipeline_mode<synchronous>, transform_indices = @transform_3, window_bounds = array<i64: 2, 128, 128>}, {pipeline_mode = #tpu.pipeline_mode<synchronous>, transform_indices = @transform_4, window_bounds = array<i64: 2, 1, 128>}, {transform_indices = @transform_5, window_bounds = array<i64: 16, 128>}]} {
    %c0 = arith.constant 0 : index
    %c0_0 = arith.constant 0 : index
    %0 = vector.load %arg1[%c0, %c0_0] : memref<16x128xbf16, #tpu.memory_space<vmem>>, vector<16x128xbf16>
    %c0_1 = arith.constant 0 : index
    %c0_2 = arith.constant 0 : index
    %1 = vector.load %arg2[%c0_1, %c0_2] : memref<128x128xbf16, #tpu.memory_space<vmem>>, vector<128x128xbf16>
    %cst = arith.constant dense<0.000000e+00> : vector<16x128xf32>
    %2 = tpu.matmul %0, %1, %cst {dimension_numbers = #tpu.dot_dimension_numbers<[1], [0], [0], [1], [0, 0, 1, 1], [], []>} : vector<16x128xbf16>, vector<128x128xbf16>, vector<16x128xf32> -> vector<16x128xf32>
    %c0_3 = arith.constant 0 : index
    %c0_4 = arith.constant 0 : index
    %3 = vector.load %arg3[%c0_3, %c0_4] : memref<1x128xf32, #tpu.memory_space<vmem>>, vector<1x128xf32>
    %4 = vector.broadcast %3 : vector<1x128xf32> to vector<16x128xf32>
    %5 = arith.addf %2, %4 : vector<16x128xf32>
    %cst_5 = arith.constant 0.000000e+00 : f32
    %6 = vector.broadcast %cst_5 : f32 to vector<16x128xf32>
    %7 = arith.maximumf %5, %6 : vector<16x128xf32>
    %8 = arith.truncf %7 : vector<16x128xf32> to vector<16x128xbf16>
    %c0_6 = arith.constant 0 : index
    %c0_7 = arith.constant 0 : index
    %c0_8 = arith.constant 0 : index
    %9 = vector.load %arg4[%c0_6, %c0_7, %c0_8] : memref<2x128x128xbf16, #tpu.memory_space<vmem>>, vector<1x128x128xbf16>
    %10 = vector.shape_cast %9 : vector<1x128x128xbf16> to vector<128x128xbf16>
    %cst_9 = arith.constant dense<0.000000e+00> : vector<16x128xf32>
    %11 = tpu.matmul %8, %10, %cst_9 {dimension_numbers = #tpu.dot_dimension_numbers<[1], [0], [0], [1], [0, 0, 1, 1], [], []>} : vector<16x128xbf16>, vector<128x128xbf16>, vector<16x128xf32> -> vector<16x128xf32>
    %c0_10 = arith.constant 0 : index
    %c0_11 = arith.constant 0 : index
    %c0_12 = arith.constant 0 : index
    %12 = vector.load %arg5[%c0_10, %c0_11, %c0_12] : memref<2x1x128xf32, #tpu.memory_space<vmem>>, vector<1x1x128xf32>
    %13 = vector.shape_cast %12 : vector<1x1x128xf32> to vector<1x128xf32>
    %14 = vector.broadcast %13 : vector<1x128xf32> to vector<16x128xf32>
    %15 = arith.addf %11, %14 : vector<16x128xf32>
    %cst_13 = arith.constant 0.000000e+00 : f32
    %16 = vector.broadcast %cst_13 : f32 to vector<16x128xf32>
    %17 = arith.maximumf %15, %16 : vector<16x128xf32>
    %18 = arith.truncf %17 : vector<16x128xf32> to vector<16x128xbf16>
    %c1 = arith.constant 1 : index
    %c0_14 = arith.constant 0 : index
    %c0_15 = arith.constant 0 : index
    %19 = vector.load %arg4[%c1, %c0_14, %c0_15] : memref<2x128x128xbf16, #tpu.memory_space<vmem>>, vector<1x128x128xbf16>
    %20 = vector.shape_cast %19 : vector<1x128x128xbf16> to vector<128x128xbf16>
    %cst_16 = arith.constant dense<0.000000e+00> : vector<16x128xf32>
    %21 = tpu.matmul %18, %20, %cst_16 {dimension_numbers = #tpu.dot_dimension_numbers<[1], [0], [0], [1], [0, 0, 1, 1], [], []>} : vector<16x128xbf16>, vector<128x128xbf16>, vector<16x128xf32> -> vector<16x128xf32>
    %c1_17 = arith.constant 1 : index
    %c0_18 = arith.constant 0 : index
    %c0_19 = arith.constant 0 : index
    %22 = vector.load %arg5[%c1_17, %c0_18, %c0_19] : memref<2x1x128xf32, #tpu.memory_space<vmem>>, vector<1x1x128xf32>
    %23 = vector.shape_cast %22 : vector<1x1x128xf32> to vector<1x128xf32>
    %24 = vector.broadcast %23 : vector<1x128xf32> to vector<16x128xf32>
    %25 = arith.addf %21, %24 : vector<16x128xf32>
    %c0_20 = arith.constant 0 : index
    %c0_21 = arith.constant 0 : index
    %26 = vector.load %arg6[%c0_20, %c0_21] : memref<16x128xf32, #tpu.memory_space<vmem>>, vector<16x128xf32>
    tpu.vector_store %arg6[%c0_20, %c0_21], %25 {strides = array<i32>} : memref<16x128xf32, #tpu.memory_space<vmem>>, vector<16x128xf32>,
    return
  }
  func.func @transform_0(%arg0: i32) -> (i32, i32) {
    %c0_i32 = arith.constant 0 : i32
    %c0_i32_0 = arith.constant 0 : i32
    return %arg0, %c0_i32 : i32, i32
  }
  func.func @transform_1(%arg0: i32) -> (i32, i32) {
    %c0_i32 = arith.constant 0 : i32
    %c0_i32_0 = arith.constant 0 : i32
    %c0_i32_1 = arith.constant 0 : i32
    return %c0_i32, %c0_i32_0 : i32, i32
  }
  func.func @transform_2(%arg0: i32) -> (i32, i32) {
    %c0_i32 = arith.constant 0 : i32
    %c0_i32_0 = arith.constant 0 : i32
    %c0_i32_1 = arith.constant 0 : i32
    return %c0_i32, %c0_i32_0 : i32, i32
  }
  func.func @transform_3(%arg0: i32) -> (i32, i32, i32) {
    %c0_i32 = arith.constant 0 : i32
    %c0_i32_0 = arith.constant 0 : i32
    %c0_i32_1 = arith.constant 0 : i32
    %c0_i32_2 = arith.constant 0 : i32
    return %c0_i32, %c0_i32_0, %c0_i32_1 : i32, i32, i32
  }
  func.func @transform_4(%arg0: i32) -> (i32, i32, i32) {
    %c0_i32 = arith.constant 0 : i32
    %c0_i32_0 = arith.constant 0 : i32
    %c0_i32_1 = arith.constant 0 : i32
    %c0_i32_2 = arith.constant 0 : i32
    return %c0_i32, %c0_i32_0, %c0_i32_1 : i32, i32, i32
  }
  func.func @transform_5(%arg0: i32) -> (i32, i32) {
    %c0_i32 = arith.constant 0 : i32
    %c0_i32_0 = arith.constant 0 : i32
    return %arg0, %c0_i32 : i32, i32
  }
}

</mosaic_0001>

<bundles_post_ra>
// kernel: _apply_packed.1
= control target key start
LH: loop header
LB: loop body
LE: loop exit
PB: predicated region body
PF: predicated region fallthrough
CT: control target
= control target key end

     0   :  { %10 = vsyncpa [#allocation3], 0  ;;  %s609_s0 = inlined_call_operand.vmem [shape: bf16[16,128], index: 0, kind: input, shape index: {}]   ;;  %s610_s1 = inlined_call_operand.hbm [shape: bf16[128,128], index: 1, kind: input, shape index: {}]   ;;  %s611_s2 = inlined_call_operand.vmem [shape: f32[1,128], index: 2, kind: input, shape index: {}]   ;;  %s612_s3 = inlined_call_operand.hbm [shape: bf16[2,128,128], index: 3, kind: input, shape index: {}]   ;;  %s613_s4 = inlined_call_operand.vmem [shape: f32[2,1,128], index: 4, kind: input, shape index: {}]   ;;  %s614_s5 = inlined_call_operand.hbm [shape: f32[16,128], index: 5, kind: output, shape index: {}]  }
   0x1   :  { %11 = vsyncpa [#allocation6], 0 }
   0x2   :  { %12 = vsyncpa [#allocation4], 0  ;;  %s19_s20 = sshll.u32 %s610_s1, 4  ;;  %s551_s21 = smov [#allocation2]   ;;  %s20_s20 = int_to_ptr.hbm [resolvable:$true] %s19_s20 }
   0x3   :  { %s21_s22 = sshll.u32 %s551_s21, 4  ;;  %s34_s25 = sshll.u32 %s612_s3, 4  ;;  %s22_s22 = int_to_ptr.vmem [resolvable:$true] %s21_s22  ;;  %s35_s25 = int_to_ptr.hbm [resolvable:$true] %s34_s25 }
   0x4   :  { %s552_s26 = smov 64   ;;  %s553_s27 = smov 4  }
   0x5   :  { %27 = dma.hbm_to_vmem [thread:$0]  %s20_s20, 1024, %s22_s22, [#allocation3], %s552_s26, %s552_s26, %s553_s27  }
   0x6   :  { %s554_s28 = smov [#allocation5]  }
   0x7   :  { %s36_s29 = sshll.u32 %s554_s28, 4  ;;  %s37_s29 = int_to_ptr.vmem [resolvable:$true] %s36_s29 }
   0x8   :  { %42 = dma.hbm_to_vmem [thread:$0]  %s35_s25, 2048, %s37_s29, [#allocation6], %s552_s26, %s552_s26, %s553_s27  }
   0x9   :  { %545 = dma.done.wait [#allocation3], 1024  }
   0xa   :  { %546 = vsyncadd [#allocation3], 4294966272 }
   0xb   :  { %547 = dma.done.wait [#allocation6], 2048  }
   0xc   :  { %548 = vsyncadd [#allocation6], 4294965248  ;;  %v446_v0 = vld [vmem:[#allocation2 + $0x38] sm:$0xff]  ;;  %v445_v1 = vld [vmem:[#allocation2 + $0x30] sm:$0xff]  ;;  %s555_s9 = smov [#allocation7]   ;;  %s323_s13 = sshll.u32 %s614_s5, 4  ;;  %s324_s13 = int_to_ptr.hbm [resolvable:$true] %s323_s13 }
   0xd   :  { %129 = vmatpush.bf16.msra.mxu0 %v446_v0  ;;  %v454_v2 = vld [vmem:[#allocation5 + $0x38] sm:$0xff]  ;;  %v453_v3 = vld [vmem:[#allocation5 + $0x30] sm:$0xff]  ;;  %v444_v4 = vld [vmem:[#allocation2 + $0x28] sm:$0xff]  ;;  %s321_s10 = sshll.u32 %s555_s9, 4  ;;  %s556_s14 = smov 128   ;;  %s322_s10 = int_to_ptr.vmem [resolvable:$true] %s321_s10 }
   0xe   :  { %214 = vmatpush.bf16.msra.mxu1 %v454_v2  ;;  %v452_v5 = vld [vmem:[#allocation5 + $0x28] sm:$0xff]  ;;  %v443_v6 = vld [vmem:[#allocation2 + $0x20] sm:$0xff]  ;;  %v442_v8 = vld [vmem:[#allocation2 + $0x18] sm:$0xff]  ;;  %s557_s15 = smov 8  }
   0xf   :  { %v451_v7 = vld [vmem:[#allocation5 + $0x20] sm:$0xff]  ;;  %v441_v9 = vld [vmem:[#allocation2 + $0x10] sm:$0xff]  ;;  %v440_v10 = vld [vmem:[#allocation2 + $0x8] sm:$0xff] }
  0x10   :  { %v439_v11 = vld [vmem:[#allocation2] sm:$0xff]  ;;  %v450_v13 = vld [vmem:[#allocation5 + $0x18] sm:$0xff]  ;;  %v449_v14 = vld [vmem:[#allocation5 + $0x10] sm:$0xff] }
  0x11   :  { %130 = vmatpush.bf16.msra.mxu0 %v445_v1  ;;  %v438_v12 = vld [vmem:[%s609_s0] sm:$0xff]  ;;  %v448_v15 = vld [vmem:[#allocation5 + $0x8] sm:$0xff]  ;;  %v462_v17 = vld [vmem:[#allocation5 + $0x78] sm:$0xff] }
  0x12   :  { %215 = vmatpush.bf16.msra.mxu1 %v453_v3  ;;  %v447_v16 = vld [vmem:[#allocation5] sm:$0xff]  ;;  %301 = vmatpush.bf16.msra.mxu2 %v462_v17  ;;  %v461_v18 = vld [vmem:[#allocation5 + $0x70] sm:$0xff]  ;;  %v460_v19 = vld [vmem:[#allocation5 + $0x68] sm:$0xff] }
  0x13   :  { %v459_v20 = vld [vmem:[#allocation5 + $0x60] sm:$0xff]  ;;  %v458_v29 = vld [vmem:[#allocation5 + $0x58] sm:$0xff]  ;;  %v457_v30 = vld [vmem:[#allocation5 + $0x50] sm:$0xff] }
  0x14   :  { %v470_v22 = vld [vmem:[%s611_s2] ss:$0 sm:$0xff]  ;;  %v456_v31 = vld [vmem:[#allocation5 + $0x48] sm:$0xff]  ;;  %v472_v41 = vld [vmem:[%s613_s4 + $0x1] ss:$0 sm:$0xff] }
  0x15   :  { %131 = vmatpush.bf16.msra.mxu0 %v444_v4  ;;  %v455_v32 = vld [vmem:[#allocation5 + $0x40] sm:$0xff] }
  0x16   :  { %216 = vmatpush.bf16.msra.mxu1 %v452_v5  ;;  %302 = vmatpush.bf16.msra.mxu2 %v461_v18  ;;  %v471_v34 = vld [vmem:[%s613_s4] ss:$0 sm:$0xff] }
  0x19   :  { %132 = vmatpush.bf16.msra.mxu0 %v443_v6 }
  0x1a   :  { %217 = vmatpush.bf16.msra.mxu1 %v451_v7  ;;  %303 = vmatpush.bf16.msra.mxu2 %v460_v19 }
  0x1d   :  { %133 = vmatpush.bf16.msra.mxu0 %v442_v8 }
  0x1e   :  { %218 = vmatpush.bf16.msra.mxu1 %v450_v13  ;;  %304 = vmatpush.bf16.msra.mxu2 %v459_v20 }
  0x21   :  { %134 = vmatpush.bf16.msra.mxu0 %v441_v9 }
  0x22   :  { %219 = vmatpush.bf16.msra.mxu1 %v449_v14  ;;  %305 = vmatpush.bf16.msra.mxu2 %v458_v29 }
  0x25   :  { %135 = vmatpush.bf16.msra.mxu0 %v440_v10 }
  0x26   :  { %220 = vmatpush.bf16.msra.mxu1 %v448_v15  ;;  %306 = vmatpush.bf16.msra.mxu2 %v457_v30 }
  0x29   :  { %136 = vmatpush.bf16.msra.mxu0 %v439_v11 }
  0x2a   :  { %221 = vmatpush.bf16.msra.mxu1 %v447_v16  ;;  %307 = vmatpush.bf16.msra.mxu2 %v456_v31 }
  0x2c   :  { %137 = vmatmul.bf16.vlgmr.msra.gmra.mxu0 %v438_v12 }
  0x2e   :  { %308 = vmatpush.bf16.msra.mxu2 %v455_v32 }
  0xa9   :  { %v138_v21 = vpop.f32.mrf.mxu0 }
  0xaa   :  { %v139_v23 = vadd.f32 %v470_v22, %v138_v21 }
  0xac   :  { %v143_v26 = vmax.f32 %v139_v23, 0.0 }
  0xb1   :  { %v140_v24 = vpop.f32.mrf.mxu0 }
  0xb2   :  { %v141_v25 = vadd.f32 %v470_v22, %v140_v24 }
  0xb4   :  { %v144_v27 = vmax.f32 %v141_v25, 0.0 }
  0xb6   :  { %v145_v28 = vpack.c.bf16 %v144_v27, %v143_v26 }
  0xb8   :  { %222 = vmatmul.bf16.vlgmr.msra.gmra.mxu1 %v145_v28 }
 0x135   :  { %v223_v33 = vpop.f32.mrf.mxu1 }
 0x136   :  { %v224_v35 = vadd.f32 %v471_v34, %v223_v33 }
 0x138   :  { %v228_v38 = vmax.f32 %v224_v35, 0.0 }
 0x13d   :  { %v225_v36 = vpop.f32.mrf.mxu1 }
 0x13e   :  { %v226_v37 = vadd.f32 %v471_v34, %v225_v36 }
 0x140   :  { %v229_v39 = vmax.f32 %v226_v37, 0.0 }
 0x142   :  { %v230_v40 = vpack.c.bf16 %v229_v39, %v228_v38 }
 0x144   :  { %309 = vmatmul.bf16.vlgmr.msra.gmra.mxu2 %v230_v40 }
 0x1c7   :  { %v310_v42 = vpop.f32.mrf.mxu2 }
 0x1c8   :  { %v311_v43 = vadd.f32 %v472_v41, %v310_v42 }
 0x1ca   :  { %315 = vst [vmem:[#allocation7] sm:$0xff] %v311_v43 }
 0x1cf   :  { %v312_v44 = vpop.f32.mrf.mxu2 }
 0x1d0   :  { %v313_v45 = vadd.f32 %v472_v41, %v312_v44 }
 0x1d2   :  { %316 = vst [vmem:[#allocation7 + $0x8] sm:$0xff] %v313_v45 }
 0x1d3   :  { %329 = dma.vmem_to_hbm [thread:$0]  %s322_s10, 256, %s324_s13, [#allocation4], %s556_s14, %s556_s14, %s557_s15  }
 0x1d4   :  { %549 = dma.done.wait [#allocation4], 256  }
 0x1d5   :  { %550 = vsyncadd [#allocation4], 4294967040 }
 0x1d6   :  { %334 = vsyncpa [#allocation3], 1 }
 0x1d7   :  { %335 = vsyncpa [#allocation6], 1 }
 0x1d8   :  { %336 = vsyncpa [#allocation4], 1 }

</bundles_post_ra>
